<compile_context>
chip_gen: v7x
topology: tpu7x:2x2x1
jax: 0.10.0
libtpu: 0.0.40
codegen_flags: <defaults>
</compile_context>

<pallas_src>
import functools

import jax
import jax.numpy as jnp
from jax.experimental import pallas as pl
from jax.experimental.pallas import tpu as pltpu


def _round_up(x, m):
    return ((x + m - 1) // m) * m


def _tcn_conv_bnstats_kernel(x_ref, w_ref, y_ref, psum_ref, psq_ref, slab_ref,
                             *, col_offsets, n_cols, x_start):
    """One batch sample per grid step.

    x_ref   : (1, C_in, Lx)        raw input slab (f32 if stride==1, bf16 phase-split else)
    w_ref   : (K, C_out, C_in_pad) bf16 weights (constant index_map -> stays resident)
    y_ref   : (1, C_out, n_cols)   bf16 conv output (bias-free; bias cancels in train-mode BN)
    psum_ref: (1, C_out, 1)        f32 per-sample sum of y
    psq_ref : (1, C_out, 1)        f32 per-sample CENTERED sum of squares of y
    slab_ref: (C_in_pad, Ls)       bf16 scratch = zero-padded, bf16-cast input slab
    """
    c_in = x_ref.shape[1]
    x_len = x_ref.shape[2]
    c_out = w_ref.shape[1]

    # Build the zero-padded bf16 slab in VMEM -- the padded/cast copy of x never touches HBM.
    if x_start > 0 or x_len < slab_ref.shape[1] or c_in < slab_ref.shape[0]:
        slab_ref[...] = jnp.zeros(slab_ref.shape, slab_ref.dtype)
    slab_ref[0:c_in, x_start:x_start + x_len] = x_ref[0].astype(slab_ref.dtype)
    slab = slab_ref[...]                                       # (C_in_pad, Ls) bf16

    # Conv = K accumulated shifted matmuls on the MXU (bf16 operands, f32 accumulation).
    # MXU/VALU utilization is irrelevant here -- the kernel is HBM-bound.
    acc = jnp.zeros((c_out, n_cols), jnp.float32)
    for k, off in enumerate(col_offsets):                      # static unroll over taps
        acc = acc + jnp.dot(w_ref[k], slab[:, off:off + n_cols],
                            preferred_element_type=jnp.float32)

    y_ref[0] = acc.astype(y_ref.dtype)                         # lane-dense bf16 store

    # Per-sample partial BN statistics (XLU lane reductions, hidden under the DMA shadow).
    tsum = jnp.sum(acc, axis=1, keepdims=True)                  # (C_out, 1)
    diff = acc - tsum * (1.0 / n_cols)                          # centered -> no cancellation
    psum_ref[0] = tsum
    psq_ref[0] = jnp.sum(diff * diff, axis=1, keepdims=True)


def tcn_forward(x, w, b, gamma, beta, *, stride=1, eps=1e-5):
    """Tcn forward: Conv2d((K,1), pad=((K-1)//2,0), stride=(stride,1)) + BatchNorm2d with
    training-mode batch statistics.  x: (N, C_in, T, V) f32  ->  (N, C_out, T_out, V) f32.
    """
    N, C_in, T, V = x.shape
    C_out = w.shape[0]
    K = w.shape[2]
    del b  # conv bias shifts every channel uniformly -> cancels exactly in train-mode BN.
    # TODO(synk): re-add the conv bias if eval-mode (running-stats) BatchNorm is ever needed.
    pad = (K - 1) // 2
    T_out = (T + 2 * pad - K) // stride + 1
    n_cols = T_out * V

    # Weights: (C_out, C_in, K, 1) -> (K, C_out, C_in_pad) bf16 (tiny, resident in VMEM).
    c_in_pad = _round_up(C_in, 16)                      # bf16 sublane-packing alignment
    w_k = jnp.transpose(w[:, :, :, 0], (2, 0, 1)).astype(jnp.bfloat16)
    if c_in_pad != C_in:
        w_k = jnp.pad(w_k, ((0, 0), (0, 0), (0, c_in_pad - C_in)))

    if stride == 1:
        # Raw f32 input, free reshape; zero padding + bf16 cast happen inside the kernel.
        x_in = x.reshape(N, C_in, T * V)
        x_len, x_start = T * V, pad * V
        slab_len = (T + 2 * pad) * V
        col_offsets = tuple(k * V for k in range(K))
    else:
        # stride>1: one fused pad + phase-split relayout pass (no K-times im2col expansion).
        # With tau = u*stride + r:  x_ph[.., r, u*V+v] = x_pad[.., tau, v], so conv tap k uses
        # phase (k % stride) starting at column (k // stride)*V.
        t_pad_len = T + 2 * pad
        u_len = -(-t_pad_len // stride)
        x_ph = jnp.pad(x.astype(jnp.bfloat16),
                       ((0, 0), (0, 0), (pad, pad + u_len * stride - t_pad_len), (0, 0)))
        x_in = jnp.transpose(x_ph.reshape(N, C_in, u_len, stride, V),
                             (0, 1, 3, 2, 4)).reshape(N, C_in, stride * u_len * V)
        x_len, x_start = stride * u_len * V, 0
        slab_len = x_len
        col_offsets = tuple((k % stride) * u_len * V + (k // stride) * V for k in range(K))

    kernel = functools.partial(
        _tcn_conv_bnstats_kernel,
        col_offsets=col_offsets, n_cols=n_cols, x_start=x_start)

    # Explicit VMEM budget: double-buffered in/out blocks + scratch + weights, with headroom,
    # capped at 64 MiB so it is valid on v7x as well as v5e/v6e.
    def padded_bytes(shape, itemsize):
        s = list(shape)
        s[-1] = _round_up(s[-1], 128)
        if len(s) >= 2:
            s[-2] = _round_up(s[-2], 8)
        n = 1
        for d in s:
            n *= d
        return n * itemsize

    vmem_est = (2 * padded_bytes((1, C_in, x_len), x_in.dtype.itemsize)
                + 2 * padded_bytes((1, C_out, n_cols), 2)
                + 4 * padded_bytes((1, C_out, 1), 4)
                + 2 * padded_bytes((K, C_out, c_in_pad), 2)
                + padded_bytes((c_in_pad, slab_len), 2))
    vmem_limit = int(min(max(2 * vmem_est, 32 << 20), 64 << 20))
    # TODO(synk): for very large C_in*T*V (slab >~ 8 MiB) add a T-tiled grid axis with a
    # (K-1)-halo DMA so VMEM stays bounded and v7x's second TensorCore gets work even at N==1.

    y_bf, psum, psq = pl.pallas_call(
        kernel,
        out_shape=(
            jax.ShapeDtypeStruct((N, C_out, n_cols), jnp.bfloat16),
            jax.ShapeDtypeStruct((N, C_out, 1), jnp.float32),
            jax.ShapeDtypeStruct((N, C_out, 1), jnp.float32),
        ),
        grid=(N,),
        in_specs=[
            pl.BlockSpec((1, C_in, x_len), lambda n: (n, 0, 0)),
            pl.BlockSpec((K, C_out, c_in_pad), lambda n: (0, 0, 0)),
        ],
        out_specs=(
            pl.BlockSpec((1, C_out, n_cols), lambda n: (n, 0, 0)),
            pl.BlockSpec((1, C_out, 1), lambda n: (n, 0, 0)),
            pl.BlockSpec((1, C_out, 1), lambda n: (n, 0, 0)),
        ),
        scratch_shapes=[pltpu.VMEM((c_in_pad, slab_len), jnp.bfloat16)],
        compiler_params=pltpu.CompilerParams(
            dimension_semantics=("parallel",),      # independent per-sample blocks
            vmem_limit_bytes=vmem_limit,
        ),
    )(x_in, w_k)

    # --- tiny per-channel BN scalars (train-mode batch mean / biased variance), merged from
    #     per-sample centered partials with the pairwise-variance formula ---
    cnt = float(n_cols)
    m_tot = float(N * n_cols)
    tile_sum = psum[:, :, 0]                                   # (N, C_out)
    tile_ss = psq[:, :, 0]                                     # (N, C_out), centered
    mean = jnp.sum(tile_sum, axis=0) / m_tot                   # (C_out,)
    tile_mean = tile_sum / cnt
    ss = jnp.sum(tile_ss, axis=0) + cnt * jnp.sum((tile_mean - mean[None, :]) ** 2, axis=0)
    var = jnp.maximum(ss / m_tot, 0.0)
    scale = gamma * jax.lax.rsqrt(var + eps)
    shift = beta - mean * scale                                # conv bias cancels exactly here

    # --- BN affine + upcast fused into one lane-dense elementwise pass; NCHW is a free
    #     reshape (no transpose) ---
    out = y_bf.astype(jnp.float32) * scale[None, :, None] + shift[None, :, None]
    return out.reshape(N, C_out, T_out, V)


if __name__ == "__main__":
    N, C_in, C_out, T, V, K = 2, 4, 8, 16, 16, 9
    key = jax.random.PRNGKey(0)
    kx, kw = jax.random.split(key)

    x = jax.random.normal(kx, (N, C_in, T, V), jnp.float32)

    # deterministic "kaiming_normal_(mode='fan_out')" init: std = sqrt(2 / (C_out*K*1))
    std = (2.0 / (C_out * K)) ** 0.5
    w = std * jax.random.normal(kw, (C_out, C_in, K, 1), jnp.float32)
    b = jnp.zeros((C_out,), jnp.float32)        # init.constant_(conv.bias, 0)
    gamma = jnp.ones((C_out,), jnp.float32)     # init_bn(bn, 1)
    beta = jnp.zeros((C_out,), jnp.float32)

    def reference(x, w, b, gamma, beta, stride):
        padr = (K - 1) // 2
        yc = jax.lax.conv_general_dilated(
            x, w, window_strides=(stride, 1), padding=((padr, padr), (0, 0)),
            dimension_numbers=("NCHW", "OIHW", "NCHW"),
            precision=jax.lax.Precision.HIGHEST,
        ) + b.reshape(1, -1, 1, 1)
        mu = yc.mean(axis=(0, 2, 3), keepdims=True)
        vv = yc.var(axis=(0, 2, 3), keepdims=True)
        return (yc - mu) * jax.lax.rsqrt(vv + 1e-5) * gamma.reshape(1, -1, 1, 1) \
               + beta.reshape(1, -1, 1, 1)

    for stride in (1, 2):
        fwd = jax.jit(functools.partial(tcn_forward, stride=stride))
        out = jax.block_until_ready(fwd(x, w, b, gamma, beta))
        ref = reference(x, w, b, gamma, beta, stride)
        assert out.shape == ref.shape, (stride, out.shape, ref.shape)
        err = float(jnp.max(jnp.abs(out - ref)))
        # bf16 MXU operands + bf16 y storage (f32 accumulation/statistics) vs. a pure-f32
        # reference on BN-normalized outputs -> tolerance reflects bf16 precision.
        assert err < 7.5e-2, f"stride={stride}: max abs error too large: {err}"

    print("KERNEL_OK")
</pallas_src>

<mosaic_0001>
module attributes {stable_mosaic.version = 11 : i64} {
  func.func @_tcn_conv_bnstats_kernel(%arg0: i32, %arg1: memref<1x4x256xf32, #tpu.memory_space<vmem>>, %arg2: memref<9x8x16xbf16, #tpu.memory_space<vmem>>, %arg3: memref<1x8x256xbf16, #tpu.memory_space<vmem>>, %arg4: memref<1x8x1xf32, #tpu.memory_space<vmem>>, %arg5: memref<1x8x1xf32, #tpu.memory_space<vmem>>, %arg6: memref<16x384xbf16, #tpu.memory_space<vmem>>) attributes {dimension_semantics = [#tpu.dimension_semantics<parallel>], iteration_bounds = array<i64: 2>, scalar_prefetch = 0 : i64, scratch_operands = 1 : i64, tpu.core_type = #tpu.core_type<tc>, window_params = [{transform_indices = @transform_0, window_bounds = array<i64: 1, 4, 256>}, {pipeline_mode = #tpu.pipeline_mode<synchronous>, transform_indices = @transform_1, window_bounds = array<i64: 9, 8, 16>}, {transform_indices = @transform_2, window_bounds = array<i64: 1, 8, 256>}, {transform_indices = @transform_3, window_bounds = array<i64: 1, 8, 1>}, {transform_indices = @transform_4, window_bounds = array<i64: 1, 8, 1>}]} {
    %cst = arith.constant 0.000000e+00 : bf16
    %0 = vector.broadcast %cst : bf16 to vector<16x384xbf16>
    %c0 = arith.constant 0 : index
    %c0_0 = arith.constant 0 : index
    %1 = vector.load %arg6[%c0, %c0_0] : memref<16x384xbf16, #tpu.memory_space<vmem>>, vector<16x384xbf16>
    tpu.vector_store %arg6[%c0, %c0_0], %0 {strides = array<i32>} : memref<16x384xbf16, #tpu.memory_space<vmem>>, vector<16x384xbf16>,
    %c0_1 = arith.constant 0 : index
    %c0_2 = arith.constant 0 : index
    %c0_3 = arith.constant 0 : index
    %2 = vector.load %arg1[%c0_1, %c0_2, %c0_3] : memref<1x4x256xf32, #tpu.memory_space<vmem>>, vector<1x4x256xf32>
    %3 = vector.shape_cast %2 : vector<1x4x256xf32> to vector<4x256xf32>
    %4 = arith.truncf %3 : vector<4x256xf32> to vector<4x256xbf16>
    %c0_4 = arith.constant 0 : index
    %c64 = arith.constant 64 : index
    %5 = vector.load %arg6[%c0_4, %c64] : memref<16x384xbf16, #tpu.memory_space<vmem>>, vector<4x256xbf16>
    tpu.vector_store %arg6[%c0_4, %c64], %4 {strides = array<i32>} : memref<16x384xbf16, #tpu.memory_space<vmem>>, vector<4x256xbf16>,
    %c0_5 = arith.constant 0 : index
    %c0_6 = arith.constant 0 : index
    %6 = vector.load %arg6[%c0_5, %c0_6] : memref<16x384xbf16, #tpu.memory_space<vmem>>, vector<16x384xbf16>
    %cst_7 = arith.constant 0.000000e+00 : f32
    %7 = vector.broadcast %cst_7 : f32 to vector<8x256xf32>
    %c0_8 = arith.constant 0 : index
    %c0_9 = arith.constant 0 : index
    %c0_10 = arith.constant 0 : index
    %8 = vector.load %arg2[%c0_8, %c0_9, %c0_10] : memref<9x8x16xbf16, #tpu.memory_space<vmem>>, vector<1x8x16xbf16>
    %9 = vector.shape_cast %8 : vector<1x8x16xbf16> to vector<8x16xbf16>
    %10 = vector.extract_strided_slice %6 {offsets = [0, 0], sizes = [16, 256], strides = [1, 1]} : vector<16x384xbf16> to vector<16x256xbf16>
    %cst_11 = arith.constant dense<0.000000e+00> : vector<8x256xf32>
    %11 = tpu.matmul %9, %10, %cst_11 {dimension_numbers = #tpu.dot_dimension_numbers<[1], [0], [0], [1], [0, 0, 1, 1], [], []>} : vector<8x16xbf16>, vector<16x256xbf16>, vector<8x256xf32> -> vector<8x256xf32>
    %12 = arith.addf %7, %11 : vector<8x256xf32>
    %c1 = arith.constant 1 : index
    %c0_12 = arith.constant 0 : index
    %c0_13 = arith.constant 0 : index
    %13 = vector.load %arg2[%c1, %c0_12, %c0_13] : memref<9x8x16xbf16, #tpu.memory_space<vmem>>, vector<1x8x16xbf16>
    %14 = vector.shape_cast %13 : vector<1x8x16xbf16> to vector<8x16xbf16>
    %15 = vector.extract_strided_slice %6 {offsets = [0, 16], sizes = [16, 256], strides = [1, 1]} : vector<16x384xbf16> to vector<16x256xbf16>
    %cst_14 = arith.constant dense<0.000000e+00> : vector<8x256xf32>
    %16 = tpu.matmul %14, %15, %cst_14 {dimension_numbers = #tpu.dot_dimension_numbers<[1], [0], [0], [1], [0, 0, 1, 1], [], []>} : vector<8x16xbf16>, vector<16x256xbf16>, vector<8x256xf32> -> vector<8x256xf32>
    %17 = arith.addf %12, %16 : vector<8x256xf32>
    %c2 = arith.constant 2 : index
    %c0_15 = arith.constant 0 : index
    %c0_16 = arith.constant 0 : index
    %18 = vector.load %arg2[%c2, %c0_15, %c0_16] : memref<9x8x16xbf16, #tpu.memory_space<vmem>>, vector<1x8x16xbf16>
    %19 = vector.shape_cast %18 : vector<1x8x16xbf16> to vector<8x16xbf16>
    %20 = vector.extract_strided_slice %6 {offsets = [0, 32], sizes = [16, 256], strides = [1, 1]} : vector<16x384xbf16> to vector<16x256xbf16>
    %cst_17 = arith.constant dense<0.000000e+00> : vector<8x256xf32>
    %21 = tpu.matmul %19, %20, %cst_17 {dimension_numbers = #tpu.dot_dimension_numbers<[1], [0], [0], [1], [0, 0, 1, 1], [], []>} : vector<8x16xbf16>, vector<16x256xbf16>, vector<8x256xf32> -> vector<8x256xf32>
    %22 = arith.addf %17, %21 : vector<8x256xf32>
    %c3 = arith.constant 3 : index
    %c0_18 = arith.constant 0 : index
    %c0_19 = arith.constant 0 : index
    %23 = vector.load %arg2[%c3, %c0_18, %c0_19] : memref<9x8x16xbf16, #tpu.memory_space<vmem>>, vector<1x8x16xbf16>
    %24 = vector.shape_cast %23 : vector<1x8x16xbf16> to vector<8x16xbf16>
    %25 = vector.extract_strided_slice %6 {offsets = [0, 48], sizes = [16, 256], strides = [1, 1]} : vector<16x384xbf16> to vector<16x256xbf16>
    %cst_20 = arith.constant dense<0.000000e+00> : vector<8x256xf32>
    %26 = tpu.matmul %24, %25, %cst_20 {dimension_numbers = #tpu.dot_dimension_numbers<[1], [0], [0], [1], [0, 0, 1, 1], [], []>} : vector<8x16xbf16>, vector<16x256xbf16>, vector<8x256xf32> -> vector<8x256xf32>
    %27 = arith.addf %22, %26 : vector<8x256xf32>
    %c4 = arith.constant 4 : index
    %c0_21 = arith.constant 0 : index
    %c0_22 = arith.constant 0 : index
    %28 = vector.load %arg2[%c4, %c0_21, %c0_22] : memref<9x8x16xbf16, #tpu.memory_space<vmem>>, vector<1x8x16xbf16>
    %29 = vector.shape_cast %28 : vector<1x8x16xbf16> to vector<8x16xbf16>
    %30 = vector.extract_strided_slice %6 {offsets = [0, 64], sizes = [16, 256], strides = [1, 1]} : vector<16x384xbf16> to vector<16x256xbf16>
    %cst_23 = arith.constant dense<0.000000e+00> : vector<8x256xf32>
    %31 = tpu.matmul %29, %30, %cst_23 {dimension_numbers = #tpu.dot_dimension_numbers<[1], [0], [0], [1], [0, 0, 1, 1], [], []>} : vector<8x16xbf16>, vector<16x256xbf16>, vector<8x256xf32> -> vector<8x256xf32>
    %32 = arith.addf %27, %31 : vector<8x256xf32>
    %c5 = arith.constant 5 : index
    %c0_24 = arith.constant 0 : index
    %c0_25 = arith.constant 0 : index
    %33 = vector.load %arg2[%c5, %c0_24, %c0_25] : memref<9x8x16xbf16, #tpu.memory_space<vmem>>, vector<1x8x16xbf16>
    %34 = vector.shape_cast %33 : vector<1x8x16xbf16> to vector<8x16xbf16>
    %35 = vector.extract_strided_slice %6 {offsets = [0, 80], sizes = [16, 256], strides = [1, 1]} : vector<16x384xbf16> to vector<16x256xbf16>
    %cst_26 = arith.constant dense<0.000000e+00> : vector<8x256xf32>
    %36 = tpu.matmul %34, %35, %cst_26 {dimension_numbers = #tpu.dot_dimension_numbers<[1], [0], [0], [1], [0, 0, 1, 1], [], []>} : vector<8x16xbf16>, vector<16x256xbf16>, vector<8x256xf32> -> vector<8x256xf32>
    %37 = arith.addf %32, %36 : vector<8x256xf32>
    %c6 = arith.constant 6 : index
    %c0_27 = arith.constant 0 : index
    %c0_28 = arith.constant 0 : index
    %38 = vector.load %arg2[%c6, %c0_27, %c0_28] : memref<9x8x16xbf16, #tpu.memory_space<vmem>>, vector<1x8x16xbf16>
    %39 = vector.shape_cast %38 : vector<1x8x16xbf16> to vector<8x16xbf16>
    %40 = vector.extract_strided_slice %6 {offsets = [0, 96], sizes = [16, 256], strides = [1, 1]} : vector<16x384xbf16> to vector<16x256xbf16>
    %cst_29 = arith.constant dense<0.000000e+00> : vector<8x256xf32>
    %41 = tpu.matmul %39, %40, %cst_29 {dimension_numbers = #tpu.dot_dimension_numbers<[1], [0], [0], [1], [0, 0, 1, 1], [], []>} : vector<8x16xbf16>, vector<16x256xbf16>, vector<8x256xf32> -> vector<8x256xf32>
    %42 = arith.addf %37, %41 : vector<8x256xf32>
    %c7 = arith.constant 7 : index
    %c0_30 = arith.constant 0 : index
    %c0_31 = arith.constant 0 : index
    %43 = vector.load %arg2[%c7, %c0_30, %c0_31] : memref<9x8x16xbf16, #tpu.memory_space<vmem>>, vector<1x8x16xbf16>
    %44 = vector.shape_cast %43 : vector<1x8x16xbf16> to vector<8x16xbf16>
    %45 = vector.extract_strided_slice %6 {offsets = [0, 112], sizes = [16, 256], strides = [1, 1]} : vector<16x384xbf16> to vector<16x256xbf16>
    %cst_32 = arith.constant dense<0.000000e+00> : vector<8x256xf32>
    %46 = tpu.matmul %44, %45, %cst_32 {dimension_numbers = #tpu.dot_dimension_numbers<[1], [0], [0], [1], [0, 0, 1, 1], [], []>} : vector<8x16xbf16>, vector<16x256xbf16>, vector<8x256xf32> -> vector<8x256xf32>
    %47 = arith.addf %42, %46 : vector<8x256xf32>
    %c8 = arith.constant 8 : index
    %c0_33 = arith.constant 0 : index
    %c0_34 = arith.constant 0 : index
    %48 = vector.load %arg2[%c8, %c0_33, %c0_34] : memref<9x8x16xbf16, #tpu.memory_space<vmem>>, vector<1x8x16xbf16>
    %49 = vector.shape_cast %48 : vector<1x8x16xbf16> to vector<8x16xbf16>
    %50 = vector.extract_strided_slice %6 {offsets = [0, 128], sizes = [16, 256], strides = [1, 1]} : vector<16x384xbf16> to vector<16x256xbf16>
    %cst_35 = arith.constant dense<0.000000e+00> : vector<8x256xf32>
    %51 = tpu.matmul %49, %50, %cst_35 {dimension_numbers = #tpu.dot_dimension_numbers<[1], [0], [0], [1], [0, 0, 1, 1], [], []>} : vector<8x16xbf16>, vector<16x256xbf16>, vector<8x256xf32> -> vector<8x256xf32>
    %52 = arith.addf %47, %51 : vector<8x256xf32>
    %53 = arith.truncf %52 : vector<8x256xf32> to vector<8x256xbf16>
    %c0_36 = arith.constant 0 : index
    %c0_37 = arith.constant 0 : index
    %c0_38 = arith.constant 0 : index
    %54 = vector.load %arg3[%c0_36, %c0_37, %c0_38] : memref<1x8x256xbf16, #tpu.memory_space<vmem>>, vector<1x8x256xbf16>
    %55 = vector.shape_cast %54 : vector<1x8x256xbf16> to vector<8x256xbf16>
    %56 = vector.shape_cast %53 : vector<8x256xbf16> to vector<1x8x256xbf16>
    tpu.vector_store %arg3[%c0_36, %c0_37, %c0_38], %56 {strides = array<i32>} : memref<1x8x256xbf16, #tpu.memory_space<vmem>>, vector<1x8x256xbf16>,
    %cst_39 = arith.constant dense<0.000000e+00> : vector<8xf32>
    %57 = vector.multi_reduction <add>, %52, %cst_39 [1] : vector<8x256xf32> to vector<8xf32>
    %58 = vector.shape_cast %57 : vector<8xf32> to vector<8x1xf32>
    %cst_40 = arith.constant 3.906250e-03 : f32
    %59 = vector.broadcast %cst_40 : f32 to vector<8x1xf32>
    %60 = arith.mulf %58, %59 : vector<8x1xf32>
    %61 = vector.broadcast %60 : vector<8x1xf32> to vector<8x256xf32>
    %62 = arith.subf %52, %61 : vector<8x256xf32>
    %c0_41 = arith.constant 0 : index
    %c0_42 = arith.constant 0 : index
    %c0_43 = arith.constant 0 : index
    %63 = vector.load %arg4[%c0_41, %c0_42, %c0_43] : memref<1x8x1xf32, #tpu.memory_space<vmem>>, vector<1x8x1xf32>
    %64 = vector.shape_cast %63 : vector<1x8x1xf32> to vector<8x1xf32>
    %65 = vector.shape_cast %58 : vector<8x1xf32> to vector<1x8x1xf32>
    tpu.vector_store %arg4[%c0_41, %c0_42, %c0_43], %65 {strides = array<i32>} : memref<1x8x1xf32, #tpu.memory_space<vmem>>, vector<1x8x1xf32>,
    %66 = arith.mulf %62, %62 : vector<8x256xf32>
    %cst_44 = arith.constant dense<0.000000e+00> : vector<8xf32>
    %67 = vector.multi_reduction <add>, %66, %cst_44 [1] : vector<8x256xf32> to vector<8xf32>
    %68 = vector.shape_cast %67 : vector<8xf32> to vector<8x1xf32>
    %c0_45 = arith.constant 0 : index
    %c0_46 = arith.constant 0 : index
    %c0_47 = arith.constant 0 : index
    %69 = vector.load %arg5[%c0_45, %c0_46, %c0_47] : memref<1x8x1xf32, #tpu.memory_space<vmem>>, vector<1x8x1xf32>
    %70 = vector.shape_cast %69 : vector<1x8x1xf32> to vector<8x1xf32>
    %71 = vector.shape_cast %68 : vector<8x1xf32> to vector<1x8x1xf32>
    tpu.vector_store %arg5[%c0_45, %c0_46, %c0_47], %71 {strides = array<i32>} : memref<1x8x1xf32, #tpu.memory_space<vmem>>, vector<1x8x1xf32>,
    return
  }
  func.func @transform_0(%arg0: i32) -> (i32, i32, i32) {
    %c0_i32 = arith.constant 0 : i32
    %c0_i32_0 = arith.constant 0 : i32
    %c0_i32_1 = arith.constant 0 : i32
    return %arg0, %c0_i32, %c0_i32_0 : i32, i32, i32
  }
  func.func @transform_1(%arg0: i32) -> (i32, i32, i32) {
    %c0_i32 = arith.constant 0 : i32
    %c0_i32_0 = arith.constant 0 : i32
    %c0_i32_1 = arith.constant 0 : i32
    %c0_i32_2 = arith.constant 0 : i32
    return %c0_i32, %c0_i32_0, %c0_i32_1 : i32, i32, i32
  }
  func.func @transform_2(%arg0: i32) -> (i32, i32, i32) {
    %c0_i32 = arith.constant 0 : i32
    %c0_i32_0 = arith.constant 0 : i32
    %c0_i32_1 = arith.constant 0 : i32
    return %arg0, %c0_i32, %c0_i32_0 : i32, i32, i32
  }
  func.func @transform_3(%arg0: i32) -> (i32, i32, i32) {
    %c0_i32 = arith.constant 0 : i32
    %c0_i32_0 = arith.constant 0 : i32
    %c0_i32_1 = arith.constant 0 : i32
    return %arg0, %c0_i32, %c0_i32_0 : i32, i32, i32
  }
  func.func @transform_4(%arg0: i32) -> (i32, i32, i32) {
    %c0_i32 = arith.constant 0 : i32
    %c0_i32_0 = arith.constant 0 : i32
    %c0_i32_1 = arith.constant 0 : i32
    return %arg0, %c0_i32, %c0_i32_0 : i32, i32, i32
  }
}

</mosaic_0001>

<bundles_post_ra>
// kernel: tcn_forward.1
= control target key start
LH: loop header
LB: loop body
LE: loop exit
PB: predicated region body
PF: predicated region fallthrough
CT: control target
= control target key end

     0   :  { %s1017_s15 = smov 0   ;;  %s1132_s0 = inlined_call_operand.vmem [shape: f32[2,4,256], index: 0, kind: input, shape index: {}]   ;;  %s1133_s1 = inlined_call_operand.vmem [shape: bf16[9,8,16], index: 1, kind: input, shape index: {}]   ;;  %s1134_s2 = inlined_call_operand.vmem [shape: bf16[2,8,256], index: 2, kind: output, shape index: {0}]   ;;  %s1135_s3 = inlined_call_operand.vmem [shape: f32[2,8,1], index: 3, kind: output, shape index: {1}]   ;;  %s1136_s4 = inlined_call_operand.vmem [shape: f32[2,8,1], index: 4, kind: output, shape index: {2}]  }
   0x1 LB: > { %s895_s16 = sadd.s32 4294967295, %s982_s15   ;;  %p899_p0 = scmp.ge.s32.totalorder %s982_s15, 1  ;;  %s982_s15 = sphi %s1017_s15, %s15_s15  }
   0x2   : > { %p167_p1 = scmp.lt.s32.totalorder %s982_s15, 3 }
   0x4   : > { %p168_p2 = pnand %p899_p0, %p167_p1 }
   0x5   : > { %p201_p3 = scmp.lt.s32.totalorder (!%p168_p2), %s895_s16, 1  ;;  %v984_v0 = vmov (!%p168_p2), 0   ;;  %s985_s21 = smov (!%p168_p2), 64   ;;  %vm240_vm0 = vcmask (!%p168_p2), 1041920   ;;  %vm235_vm1 = vcmask (!%p168_p2), 523264   ;;  %vm243_vm2 = vcmask (!%p168_p2), 517120  }
   0x6   : > { %171 = sbr.rel (%p168_p2) target bundleno = 829 (0x33d), region = 28  ;;  %220 = vst [vmem:[#allocation2] sm:$0xff] (!%p168_p2), %v984_v0  ;;  %221 = vst [vmem:[#allocation2 + $0x8] sm:$0xff] (!%p168_p2), %v984_v0  ;;  %519 = vmatprep.mubr.bf16.mxu0 (!%p168_p2), %v984_v0  ;;  %301 = vmatprep.mubr.bf16.mxu1 (!%p168_p2), %v984_v0  ;;  %s986_s22 = smov (!%p168_p2), 112   ;;  %vm260_vm3 = vcmask (!%p168_p2), 916480   ;;  %vm265_vm4 = vcmask (!%p168_p2), 130048  }
   0x7   : > { %222 = vst [vmem:[#allocation2 + $0x10] sm:$0xff] (!%p168_p2), %v984_v0  ;;  %s987_s23 = smov (!%p168_p2), 48   ;;  %s988_s24 = smov (!%p168_p2), 32   ;;  %v913_v19 = vld [vmem:[%s1133_s1 + $0x10] sm:$0xf] (!%p168_p2)  ;;  %vm538_vm5 = vcmask (!%p168_p2), 392192  }
   0x8   : > { %s989_s25 = smov (!%p168_p2), 96   ;;  %s990_s26 = smov (!%p168_p2), 16   ;;  %v906_v29 = vld [vmem:[%s1133_s1 + $0x4] sm:$0xf] (!%p168_p2)  ;;  %vm597_vm6 = vcmask (!%p168_p2), 261120   ;;  %vm362_vm7 = vcmask (!%p168_p2), 785408  }
   0x9   : > { %s991_s27 = smov (!%p168_p2), 80   ;;  %v915_v30 = vld [vmem:[%s1133_s1 + $0x14] sm:$0xf] (!%p168_p2)  ;;  %v248_v39 = vld [vmem:[%s1133_s1] sm:$0xf] (!%p168_p2)  ;;  %vm421_vm8 = vcmask (!%p168_p2), 654336  }
   0xa   : > { %v917_v40 = vld [vmem:[%s1133_s1 + $0x18] sm:$0xf] (!%p168_p2)  ;;  %v909_v50 = vld [vmem:[%s1133_s1 + $0x8] sm:$0xf] (!%p168_p2)  ;;  %v919_v51 = vld [vmem:[%s1133_s1 + $0x1c] sm:$0xf] (!%p168_p2) }
   0xb   : > { %v911_v53 = vld [vmem:[%s1133_s1 + $0xc] sm:$0xf] (!%p168_p2)  ;;  %v921_v54 = vld [vmem:[%s1133_s1 + $0x20] sm:$0xf] (!%p168_p2)  ;;  %vm770_vm9 = vcmask (!%p168_p2), 7168  }
   0xd   : > { %s1138_s16 = smov (!%p201_p3, %s895_s16), 1 }
   0xe   : > { %s1030_s17 = sshll.u32 %s1138_s16, 3 }
   0xf   : > { %s205_s20 = scalar_lea.vmem %s1132_s0, %s1030_s17  ;;  %s218_s30 = scalar_lea.vmem %s1136_s4, %s1030_s17 }
  0x10   : > { %v223_v1 = vld [vmem:[%s205_s20] sm:$0xff] }
  0x11   : > { %v227_v2 = vpack.c.bf16 %v223_v1, %v223_v1  ;;  %v225_v3 = vcombine.high %v223_v1, %v223_v1 }
  0x13   : > { %231 = vrot.lane.b32.xlu0 %v227_v2, %s985_s21  ;;  %v228_v4 = vpack.c.bf16 %v225_v3, %v225_v3 }
  0x17   : > { %233 = vrot.lane.b32.xlu0 %v228_v4, %s985_s21 }
  0x85   : > { %v232_v5 = vpop.permute.xlu0 %231 }
  0x86   : > { %241 = vst.msk [vmem:[#allocation2] sm:$0x3] %vm240_vm0, %v232_v5 }
  0x89   : > { %v234_v6 = vpop.permute.xlu0 %233 }
  0x8a   : > { %v236_v7 = vsel %vm235_vm1, %v232_v5, %v234_v6  ;;  %244 = vst.msk [vmem:[#allocation2 + $0x10] sm:$0x3] %vm243_vm2, %v234_v6 }
  0x8b   : > { %242 = vst [vmem:[#allocation2 + $0x8] sm:$0x3] %v236_v7 }
  0x8d   : > { %v1037_v8 = vld [vmem:[#allocation2] sm:$0xff] }
  0x8e   : > { %474 = vrot.lane.b32.xlu0 %v1037_v8, %s985_s21 }
  0x91   : > { %v1040_v9 = vld [vmem:[#allocation2 + $0x10] sm:$0xff] }
  0x92   : > { %258 = vrot.lane.b32.xlu0 %v1040_v9, %s986_s22  ;;  %v1043_v10 = vld [vmem:[#allocation2 + $0x8] sm:$0xff] }
  0x93   : > { %476 = vrot.lane.b32.xlu1 %v1043_v10, %s985_s21 }
  0x96   : > { %536 = vrot.lane.b32.xlu0 %v1040_v9, %s987_s23 }
  0x97   : > { %478 = vrot.lane.b32.xlu1 %v1040_v9, %s985_s21 }
  0x9a   : > { %532 = vrot.lane.b32.xlu0 %v1037_v8, %s987_s23 }
  0x9b   : > { %256 = vrot.lane.b32.xlu1 %v1043_v10, %s986_s22 }
  0x9e   : > { %595 = vrot.lane.b32.xlu0 %v1040_v9, %s988_s24 }
  0x9f   : > { %534 = vrot.lane.b32.xlu1 %v1043_v10, %s987_s23 }
  0xa2   : > { %358 = vrot.lane.b32.xlu0 %v1043_v10, %s989_s25 }
  0xa3   : > { %254 = vrot.lane.b32.xlu1 %v1037_v8, %s986_s22 }
  0xa6   : > { %652 = vrot.lane.b32.xlu0 %v1043_v10, %s990_s26 }
  0xa7   : > { %593 = vrot.lane.b32.xlu1 %v1043_v10, %s988_s24 }
  0xaa   : > { %356 = vrot.lane.b32.xlu0 %v1037_v8, %s989_s25 }
  0xab   : > { %591 = vrot.lane.b32.xlu1 %v1037_v8, %s988_s24  ;;  %s210_s24 = scalar_lea.vmem %s1134_s2, %s1030_s17 }
  0xae   : > { %417 = vrot.lane.b32.xlu0 %v1043_v10, %s991_s27 }
  0xaf   : > { %360 = vrot.lane.b32.xlu1 %v1040_v9, %s989_s25 }
  0xb2   : > { %415 = vrot.lane.b32.xlu0 %v1037_v8, %s991_s27 }
  0xb3   : > { %654 = vrot.lane.b32.xlu1 %v1040_v9, %s990_s26 }
  0xb7   : > { %650 = vrot.lane.b32.xlu1 %v1037_v8, %s990_s26 }
  0xbb   : > { %419 = vrot.lane.b32.xlu1 %v1040_v9, %s991_s27  ;;  %s214_s27 = scalar_lea.vmem %s1135_s3, %s1030_s17 }
 0x100   : > { %v475_v11 = vpop.permute.xlu0 %474 }
 0x104   : > { %v259_v12 = vpop.permute.xlu0 %258 }
 0x105   : > { %v477_v13 = vpop.permute.xlu1 %476 }
 0x106   : > { %v480_v17 = vsel %vm235_vm1, %v475_v11, %v477_v13 }
 0x108   : > { %v537_v14 = vpop.permute.xlu0 %536 }
 0x109   : > { %v479_v15 = vpop.permute.xlu1 %478 }
 0x10a   : > { %v481_v16 = vsel %vm235_vm1, %v477_v13, %v479_v15 }
 0x10b   : > { %487 = vmatprep.subr.bf16.mxu0 %v481_v16 }
 0x10c   : > { %488 = vmatpush1.bf16.msra.mxu0 %v480_v17  ;;  %v533_v18 = vpop.permute.xlu0 %532 }
 0x10d   : > { %v257_v20 = vpop.permute.xlu1 %256 }
 0x10e   : > { %v262_v21 = vsel %vm260_vm3, %v257_v20, %v259_v12 }
 0x10f   : > { %269 = vmatprep.subr.bf16.mxu1 %v262_v21  ;;  %914 = vmatmul.mubr.msk.bf16.vlgmr.msra.gmra.mrb[0].mxu0 %vm265_vm4, %v913_v19 }
 0x110   : > { %578 = vmatprep.mubr.bf16.mxu0 %v984_v0  ;;  %v596_v22 = vpop.permute.xlu0 %595 }
 0x111   : > { %v535_v23 = vpop.permute.xlu1 %534 }
 0x112   : > { %v539_v24 = vsel %vm538_vm5, %v533_v18, %v535_v23  ;;  %v540_v25 = vsel %vm538_vm5, %v535_v23, %v537_v14 }
 0x113   : > { %546 = vmatprep.subr.bf16.mxu0 %v540_v25 }
 0x114   : > { %547 = vmatpush1.bf16.msra.mxu0 %v539_v24  ;;  %v359_v28 = vpop.permute.xlu0 %358 }
 0x115   : > { %v255_v26 = vpop.permute.xlu1 %254 }
 0x116   : > { %v261_v27 = vsel %vm260_vm3, %v255_v26, %v257_v20 }
 0x117   : > { %270 = vmatpush1.bf16.msra.mxu1 %v261_v27 }
 0x118   : > { %313 = vmatprep.subr.bf16.mxu1 %v1043_v10  ;;  %v653_v33 = vpop.permute.xlu0 %652 }
 0x119   : > { %v594_v31 = vpop.permute.xlu1 %593 }
 0x11a   : > { %907 = vmatmul.mubr.msk.bf16.vlgmr.msra.gmra.mrb[0].mxu1 %vm265_vm4, %v906_v29  ;;  %v599_v32 = vsel %vm597_vm6, %v594_v31, %v596_v22 }
 0x11b   : > { %314 = vmatpush1.bf16.msra.mxu1 %v1037_v8  ;;  %916 = vmatmul.mubr.msk.bf16.vlgmr.msra.gmra.mrb[0].mxu0 %vm265_vm4, %v915_v30 }
 0x11c   : > { %605 = vmatprep.subr.bf16.mxu0 %v599_v32  ;;  %345 = vmatprep.mubr.bf16.mxu1 %v984_v0  ;;  %v357_v38 = vpop.permute.xlu0 %356 }
 0x11d   : > { %v592_v34 = vpop.permute.xlu1 %591  ;;  %637 = vmatprep.mubr.bf16.mxu0 %v984_v0  ;;  %v363_v42 = vsel %vm362_vm7, %v357_v38, %v359_v28 }
 0x11e   : > { %v598_v35 = vsel %vm597_vm6, %v592_v34, %v594_v31 }
 0x11f   : > { %606 = vmatpush1.bf16.msra.mxu0 %v598_v35 }
 0x120   : > { %v418_v44 = vpop.permute.xlu0 %417 }
 0x121   : > { %v361_v36 = vpop.permute.xlu1 %360 }
 0x122   : > { %v364_v37 = vsel %vm362_vm7, %v359_v28, %v361_v36 }
 0x123   : > { %370 = vmatprep.subr.bf16.mxu1 %v364_v37 }
 0x124   : > { %v416_v49 = vpop.permute.xlu0 %415 }
 0x125   : > { %v655_v41 = vpop.permute.xlu1 %654  ;;  %v422_v52 = vsel %vm421_vm8, %v416_v49, %v418_v44 }
 0x126   : > { %908 = vmatmul.mubr.msk.bf16.vlgmr.msra.gmra.mrb[0].mxu1 %vm265_vm4, %v248_v39  ;;  %v658_v43 = vsel %vm265_vm4, %v653_v33, %v655_v41 }
 0x127   : > { %371 = vmatpush1.bf16.msra.mxu1 %v363_v42  ;;  %918 = vmatmul.mubr.msk.bf16.vlgmr.msra.gmra.mrb[0].mxu0 %vm265_vm4, %v917_v40 }
 0x128   : > { %664 = vmatprep.subr.bf16.mxu0 %v658_v43  ;;  %402 = vmatprep.mubr.bf16.mxu1 %v984_v0 }
 0x129   : > { %v651_v45 = vpop.permute.xlu1 %650  ;;  %696 = vmatprep.mubr.bf16.mxu0 %v984_v0 }
 0x12a   : > { %v657_v46 = vsel %vm265_vm4, %v651_v45, %v653_v33 }
 0x12b   : > { %665 = vmatpush1.bf16.msra.mxu0 %v657_v46 }
 0x12c   : > { %712 = vmatprep.subr.bf16.mxu0 %v1040_v9 }
 0x12d   : > { %v420_v47 = vpop.permute.xlu1 %419 }
 0x12e   : > { %v423_v48 = vsel %vm421_vm8, %v418_v44, %v420_v47 }
 0x12f   : > { %429 = vmatprep.subr.bf16.mxu1 %v423_v48 }
 0x132   : > { %910 = vmatmul.mubr.msk.bf16.vlgmr.msra.gmra.mrb[0].mxu1 %vm265_vm4, %v909_v50 }
 0x133   : > { %430 = vmatpush1.bf16.msra.mxu1 %v422_v52  ;;  %920 = vmatmul.mubr.msk.bf16.vlgmr.msra.gmra.mrb[0].mxu0 %vm265_vm4, %v919_v51 }
 0x134   : > { %713 = vmatpush1.bf16.msra.mxu0 %v1043_v10  ;;  %461 = vmatprep.mubr.bf16.mxu1 %v984_v0 }
 0x135   : > { %744 = vmatprep.mubr.bf16.mxu0 %v984_v0 }
 0x13e   : > { %912 = vmatmul.mubr.msk.bf16.vlgmr.msra.gmra.mrb[0].mxu1 %vm265_vm4, %v911_v53 }
 0x13f   : > { %922 = vmatmul.mubr.msk.bf16.vlgmr.msra.gmra.mrb[0].mxu0 %vm265_vm4, %v921_v54 }
 0x211   : > { %v463_v55 = vpop.f32.mrb[0].mxu1 }
 0x212   : > { %v465_v56 = vpop.f32.mrb[1].mxu1  ;;  %v746_v57 = vpop.f32.mrb[0].mxu0 }
 0x213   : > { %v929_v58 = vadd.f32 %v746_v57, %v463_v55  ;;  %v467_v59 = vpop.f32.mrb[2].mxu1  ;;  %v748_v60 = vpop.f32.mrb[1].mxu0 }
 0x214   : > { %v930_v61 = vadd.f32 %v748_v60, %v465_v56  ;;  %v468_v62 = vpop.f32.mrb[3].mxu1  ;;  %v750_v63 = vpop.f32.mrb[2].mxu0 }
 0x215   : > { %v751_v0 = vpop.f32.mrb[3].mxu0 }
 0x216   : > { %v928_v1 = vpack.c.bf16 %v930_v61, %v929_v58  ;;  %v764_v2 = vadd.f32 %v930_v61, %v929_v58 }
 0x218   : > { %763 = vst [vmem:[%s210_s24] sm:$0xff] %v928_v1  ;;  %765 = vadd.xlane.f32.xlu1 %v764_v2 }
 0x2a5   : > { %v766_v3 = vpop.xlane.xlu1 %765 }
 0x2a6   : > { %v767_v4 = vmul.f32 0.00390625, %v766_v3  ;;  %771 = vst.msk [vmem:[%s214_s27] sm:$0xff] %vm770_vm9, %v766_v3 }
 0x2a8   : > { %v768_v5 = vsub.f32 %v929_v58, %v767_v4  ;;  %v769_v6 = vsub.f32 %v930_v61, %v767_v4 }
 0x2aa   : > { %v772_v7 = vmul.f32 %v768_v5, %v768_v5  ;;  %v773_v8 = vmul.f32 %v769_v6, %v769_v6 }
 0x2ac   : > { %v774_v9 = vadd.f32 %v773_v8, %v772_v7 }
 0x2ae   : > { %775 = vadd.xlane.f32.xlu0 %v774_v9 }
 0x33b   : > { %v776_v10 = vpop.xlane.xlu0 %775 }
 0x33c   : > { %777 = vst.msk [vmem:[%s218_s30] sm:$0xff] %vm770_vm9, %v776_v10 }
 0x33d PF: > { %s15_s15 = sadd.s32 1, %s982_s15  }
 0x33e   : > { %p12_p4 = scmp.ge.s32.totalorder %s15_s15, 4  }
 0x340   :  { %14 = sbr.rel (!%p12_p4) target bundleno = 1 (0x1), region = 90 }

</bundles_post_ra>
